<compile_context>
chip_gen: v6e
topology: v6e:2x2x1
jax: 0.10.0
libtpu: 0.0.40
codegen_flags: <defaults>
</compile_context>

<pallas_src>
import functools

import jax
import jax.numpy as jnp
from jax.experimental import pallas as pl
from jax.experimental.pallas import tpu as pltpu


def _pick_batch_tile(batch, row_bytes, sub_mult,
                     max_block_bytes=2 << 20, max_rows=1024):
    """Largest batch tile keeping one (TB, row) block <= max_block_bytes.

    Returns either the full batch (always a legal second-to-last block dim) or a
    multiple of the dtype's sublane packing (`sub_mult`).  When the whole batch
    fits in one block, split into >= 2 steps (if the batch allows) so the
    'parallel' grid axis can be sharded across v7x's two TensorCores; on
    v5e/v6e the extra step just enables load/compute/store overlap.
    """
    rows = max(1, max_block_bytes // max(int(row_bytes), 1))
    rows = min(rows, max_rows)
    if batch <= rows:
        tb = batch
    else:
        tb = max(sub_mult, (rows // sub_mult) * sub_mult)
    if tb >= batch and batch >= 2 * sub_mult:
        half = -(-batch // 2)                       # cdiv(batch, 2)
        half = -(-half // sub_mult) * sub_mult      # round up to sublane packing
        tb = min(tb, half)
    return tb


def _radix_softmax_kernel(x_ref, o_ref, *, radix, cardinality, rest):
    """Blocks are (TB, C), C = cardinality * radix * rest.

    Input lanes are laid out as (g, r, e) = (cardinality, radix, rest); output
    lanes as (r, g, e) -- the PyTorch transpose(1, 2) is realized by assembling
    the permuted tile in registers and storing it full-width once.  For
    cardinality == 1 the permutation is the identity (contiguous, in-order
    chunks).  Softmax is over the radix axis via a static unrolled loop.
    """
    xt = x_ref[...].astype(jnp.float32)              # one dense load, (TB, C)
    out_chunks = [None] * (radix * cardinality)      # output lane order (r, g, e)
    for g in range(cardinality):
        base = g * radix * rest
        parts = [xt[:, base + r * rest: base + (r + 1) * rest]
                 for r in range(radix)]
        m = parts[0]
        for r in range(1, radix):
            m = jnp.maximum(m, parts[r])
        exps = []
        s = None
        for r in range(radix):
            e = jnp.exp(parts[r] - m)
            exps.append(e)
            s = e if s is None else s + e
        inv = 1.0 / s                                # exact; kernel is HBM-bound
        for r in range(radix):
            out_chunks[r * cardinality + g] = exps[r] * inv
    out = jnp.concatenate(out_chunks, axis=1)        # (TB, C), permuted lanes
    o_ref[...] = out.astype(o_ref.dtype)             # single full-width store


def _sigmoid_kernel(x_ref, o_ref):
    x = x_ref[...].astype(jnp.float32)
    # Numerically stable single-EUP sigmoid: 0.5 * (tanh(x/2) + 1).
    o_ref[...] = (0.5 * (jnp.tanh(0.5 * x) + 1.0)).astype(o_ref.dtype)


@functools.partial(jax.jit, static_argnames=("radix", "cardinality"))
def radix_softmax(x, *, radix, cardinality):
    batch = x.shape[0]
    dtype = x.dtype
    itemsize = jnp.dtype(dtype).itemsize
    sub_mult = max(8, 32 // itemsize)                # 8 f32 / 16 bf16 / 32 int8

    x2 = x.reshape(batch, -1)                        # free reshape: (B, C)

    if radix > 1:
        C = x2.shape[1]
        if C % (radix * cardinality) != 0:
            raise ValueError(
                f"channels {C} not divisible by radix*cardinality "
                f"{radix * cardinality}")
        rest = C // (radix * cardinality)
        tb = _pick_batch_tile(batch, C * itemsize, sub_mult)
        kernel = functools.partial(
            _radix_softmax_kernel, radix=radix, cardinality=cardinality, rest=rest)
        out = pl.pallas_call(
            kernel,
            out_shape=jax.ShapeDtypeStruct((batch, C), dtype),
            grid=(pl.cdiv(batch, tb),),
            in_specs=[pl.BlockSpec((tb, C), lambda b: (b, 0))],
            out_specs=pl.BlockSpec((tb, C), lambda b: (b, 0)),
            compiler_params=pltpu.CompilerParams(
                dimension_semantics=("parallel",),
                vmem_limit_bytes=32 * 1024 * 1024),
        )(x2)
        return out                                   # (B, radix*card*rest), like PyTorch
    else:
        N = x2.shape[1]
        tn = N if N <= 8192 else 8192                # lane tile (multiple of 128)
        tb = _pick_batch_tile(batch, tn * itemsize, sub_mult)
        out = pl.pallas_call(
            _sigmoid_kernel,
            out_shape=jax.ShapeDtypeStruct((batch, N), dtype),
            grid=(pl.cdiv(batch, tb), pl.cdiv(N, tn)),
            in_specs=[pl.BlockSpec((tb, tn), lambda b, n: (b, n))],
            out_specs=pl.BlockSpec((tb, tn), lambda b, n: (b, n)),
            compiler_params=pltpu.CompilerParams(
                dimension_semantics=("parallel", "parallel"),
                vmem_limit_bytes=32 * 1024 * 1024),
        )(x2)
        return out.reshape(x.shape)                  # sigmoid preserves input shape


def _reference(x, radix, cardinality):
    """Pure-JAX reference mirroring the PyTorch forward."""
    batch = x.shape[0]
    if radix > 1:
        y = x.reshape(batch, cardinality, radix, -1)
        y = jnp.transpose(y, (0, 2, 1, 3))
        y = jax.nn.softmax(y, axis=1)
        return y.reshape(batch, -1)
    return jax.nn.sigmoid(x)


if __name__ == "__main__":
    key = jax.random.PRNGKey(0)
    k1, k2, k3 = jax.random.split(key, 3)

    # Case 1: radix > 1, cardinality > 1.  x: (B, C, 1, 1), C = card*radix*rest.
    radix, card = 2, 4
    B, rest = 2, 4
    C = card * radix * rest                          # 32
    x = jax.random.normal(k1, (B, C, 1, 1), dtype=jnp.float32)
    out = jax.block_until_ready(radix_softmax(x, radix=radix, cardinality=card))
    ref = _reference(x, radix, card)
    assert out.shape == (B, C), out.shape
    assert jnp.allclose(out, ref, atol=2e-3, rtol=2e-3), "radix>1 mismatch"

    # Case 2: radix > 1, cardinality == 1 (common timm SplitAttention config):
    # identity lane permutation -> fully dense load + store path.
    x2 = jax.random.normal(k2, (2, 2 * 1 * 8, 1, 1), dtype=jnp.float32)
    out2 = jax.block_until_ready(radix_softmax(x2, radix=2, cardinality=1))
    ref2 = _reference(x2, 2, 1)
    assert jnp.allclose(out2, ref2, atol=2e-3, rtol=2e-3), "card==1 mismatch"

    # Case 3: radix == 1 -> sigmoid, shape preserved.
    x3 = jax.random.normal(k3, (2, 16, 1, 1), dtype=jnp.float32)
    out3 = jax.block_until_ready(radix_softmax(x3, radix=1, cardinality=card))
    ref3 = _reference(x3, 1, card)
    assert out3.shape == x3.shape, out3.shape
    assert jnp.allclose(out3, ref3, atol=2e-3, rtol=2e-3), "radix==1 mismatch"

    print("KERNEL_OK")
</pallas_src>

<mosaic_0001>
module attributes {stable_mosaic.version = 11 : i64} {
  func.func @_radix_softmax_kernel(%arg0: i32, %arg1: memref<2x32xf32, #tpu.memory_space<vmem>>, %arg2: memref<2x32xf32, #tpu.memory_space<vmem>>) attributes {dimension_semantics = [#tpu.dimension_semantics<parallel>], iteration_bounds = array<i64: 1>, scalar_prefetch = 0 : i64, scratch_operands = 0 : i64, tpu.core_type = #tpu.core_type<tc>, window_params = [{transform_indices = @transform_0, window_bounds = array<i64: 2, 32>}, {transform_indices = @transform_1, window_bounds = array<i64: 2, 32>}]} {
    %c0 = arith.constant 0 : index
    %c0_0 = arith.constant 0 : index
    %0 = vector.load %arg1[%c0, %c0_0] : memref<2x32xf32, #tpu.memory_space<vmem>>, vector<2x32xf32>
    %1 = vector.extract_strided_slice %0 {offsets = [0, 0], sizes = [2, 4], strides = [1, 1]} : vector<2x32xf32> to vector<2x4xf32>
    %2 = vector.extract_strided_slice %0 {offsets = [0, 4], sizes = [2, 4], strides = [1, 1]} : vector<2x32xf32> to vector<2x4xf32>
    %3 = arith.maximumf %1, %2 : vector<2x4xf32>
    %4 = arith.subf %1, %3 : vector<2x4xf32>
    %5 = math.exp %4 : vector<2x4xf32>
    %6 = arith.subf %2, %3 : vector<2x4xf32>
    %7 = math.exp %6 : vector<2x4xf32>
    %8 = arith.addf %5, %7 : vector<2x4xf32>
    %cst = arith.constant 1.000000e+00 : f32
    %9 = vector.broadcast %cst : f32 to vector<2x4xf32>
    %10 = arith.divf %9, %8 : vector<2x4xf32>
    %11 = arith.mulf %5, %10 : vector<2x4xf32>
    %12 = arith.mulf %7, %10 : vector<2x4xf32>
    %13 = vector.extract_strided_slice %0 {offsets = [0, 8], sizes = [2, 4], strides = [1, 1]} : vector<2x32xf32> to vector<2x4xf32>
    %14 = vector.extract_strided_slice %0 {offsets = [0, 12], sizes = [2, 4], strides = [1, 1]} : vector<2x32xf32> to vector<2x4xf32>
    %15 = arith.maximumf %13, %14 : vector<2x4xf32>
    %16 = arith.subf %13, %15 : vector<2x4xf32>
    %17 = math.exp %16 : vector<2x4xf32>
    %18 = arith.subf %14, %15 : vector<2x4xf32>
    %19 = math.exp %18 : vector<2x4xf32>
    %20 = arith.addf %17, %19 : vector<2x4xf32>
    %cst_1 = arith.constant 1.000000e+00 : f32
    %21 = vector.broadcast %cst_1 : f32 to vector<2x4xf32>
    %22 = arith.divf %21, %20 : vector<2x4xf32>
    %23 = arith.mulf %17, %22 : vector<2x4xf32>
    %24 = arith.mulf %19, %22 : vector<2x4xf32>
    %25 = vector.extract_strided_slice %0 {offsets = [0, 16], sizes = [2, 4], strides = [1, 1]} : vector<2x32xf32> to vector<2x4xf32>
    %26 = vector.extract_strided_slice %0 {offsets = [0, 20], sizes = [2, 4], strides = [1, 1]} : vector<2x32xf32> to vector<2x4xf32>
    %27 = arith.maximumf %25, %26 : vector<2x4xf32>
    %28 = arith.subf %25, %27 : vector<2x4xf32>
    %29 = math.exp %28 : vector<2x4xf32>
    %30 = arith.subf %26, %27 : vector<2x4xf32>
    %31 = math.exp %30 : vector<2x4xf32>
    %32 = arith.addf %29, %31 : vector<2x4xf32>
    %cst_2 = arith.constant 1.000000e+00 : f32
    %33 = vector.broadcast %cst_2 : f32 to vector<2x4xf32>
    %34 = arith.divf %33, %32 : vector<2x4xf32>
    %35 = arith.mulf %29, %34 : vector<2x4xf32>
    %36 = arith.mulf %31, %34 : vector<2x4xf32>
    %37 = vector.extract_strided_slice %0 {offsets = [0, 24], sizes = [2, 4], strides = [1, 1]} : vector<2x32xf32> to vector<2x4xf32>
    %38 = vector.extract_strided_slice %0 {offsets = [0, 28], sizes = [2, 4], strides = [1, 1]} : vector<2x32xf32> to vector<2x4xf32>
    %39 = arith.maximumf %37, %38 : vector<2x4xf32>
    %40 = arith.subf %37, %39 : vector<2x4xf32>
    %41 = math.exp %40 : vector<2x4xf32>
    %42 = arith.subf %38, %39 : vector<2x4xf32>
    %43 = math.exp %42 : vector<2x4xf32>
    %44 = arith.addf %41, %43 : vector<2x4xf32>
    %cst_3 = arith.constant 1.000000e+00 : f32
    %45 = vector.broadcast %cst_3 : f32 to vector<2x4xf32>
    %46 = arith.divf %45, %44 : vector<2x4xf32>
    %47 = arith.mulf %41, %46 : vector<2x4xf32>
    %48 = arith.mulf %43, %46 : vector<2x4xf32>
    %49 = tpu.concatenate %11, %23, %35, %47, %12, %24, %36, %48 in 1 : vector<2x4xf32>, vector<2x4xf32>, vector<2x4xf32>, vector<2x4xf32>, vector<2x4xf32>, vector<2x4xf32>, vector<2x4xf32>, vector<2x4xf32> -> vector<2x32xf32>
    %c0_4 = arith.constant 0 : index
    %c0_5 = arith.constant 0 : index
    %50 = vector.load %arg2[%c0_4, %c0_5] : memref<2x32xf32, #tpu.memory_space<vmem>>, vector<2x32xf32>
    tpu.vector_store %arg2[%c0_4, %c0_5], %49 {strides = array<i32>} : memref<2x32xf32, #tpu.memory_space<vmem>>, vector<2x32xf32>,
    return
  }
  func.func @transform_0(%arg0: i32) -> (i32, i32) {
    %c0_i32 = arith.constant 0 : i32
    %c0_i32_0 = arith.constant 0 : i32
    return %arg0, %c0_i32 : i32, i32
  }
  func.func @transform_1(%arg0: i32) -> (i32, i32) {
    %c0_i32 = arith.constant 0 : i32
    %c0_i32_0 = arith.constant 0 : i32
    return %arg0, %c0_i32 : i32, i32
  }
}

</mosaic_0001>

<bundles_post_ra>
// kernel: radix_softmax.1
= control target key start
LH: loop header
LB: loop body
LE: loop exit
PB: predicated region body
PF: predicated region fallthrough
CT: control target
= control target key end

     0   :  { %6 = vsyncpa [#allocation3], 0  ;;  %s183_s0 = inlined_call_operand.hbm [shape: f32[2,32], index: 0, kind: input, shape index: {}]   ;;  %s184_s1 = inlined_call_operand.hbm [shape: f32[2,32], index: 1, kind: output, shape index: {}]  }
   0x1   :  { %7 = vsyncpa [#allocation4], 0  ;;  %s159_s6 = smov [#allocation2]  }
   0x2   :  { %s14_s7 = sshll.u32 %s159_s6, 4  ;;  %s15_s7 = int_to_ptr.vmem [resolvable:$true] %s14_s7 }
   0x3   :  { %s123_s8 = scalar_lea.vmem %s15_s7, 32  ;;  %p128_p1 = scmp.lt.s32.totalorder %s15_s7, %s15_s7 }
   0x4   :  { %p124_p0 = scmp.ne.s32.totalorder %s15_s7, %s123_s8  ;;  %p129_p2 = scmp.lt.s32.totalorder %s123_s8, %s123_s8 }
   0x6   :  { %p130_p3 = por %p129_p2, %p128_p1 }
   0x8   :  { %p131_p4 = pnand %p130_p3, %p124_p0 }
   0xa   :  { %134 = shalt.err (!%p131_p4)
}
   0xb   :  { %17 = dma.hbm_to_vmem [thread:$0]  %s183_s0, 32, %s15_s7, [#allocation3]  }
   0xc   :  { %155 = dma.done.wait [#allocation3], 32  }
   0xd   :  { %156 = vsyncadd [#allocation3], 4294967264  ;;  %v21_v0 = vld [vmem:[#allocation2] sm:$0x3]  ;;  %s160_s11 = smov 124   ;;  %s161_s12 = smov 4  }
   0xe   :  { %23 = vrot.lane.b32.xlu0 %v21_v0, %s160_s11  ;;  %s162_s0 = smov 120   ;;  %s163_s13 = smov 116   ;;  %vm70_vm0 = vcmask 31744   ;;  %vm72_vm1 = vcmask 64512   ;;  %vm74_vm2 = vcmask 97280   ;;  %vm76_vm3 = vcmask 130048  }
   0xf   :  { %s164_s14 = smov 12   ;;  %s165_s15 = smov 8   ;;  %vm78_vm4 = vcmask 162816   ;;  %vm80_vm5 = vcmask 195584   ;;  %vm82_vm6 = vcmask 228352   ;;  %vm84_vm7 = vcmask 254976  }
  0x10   :  { %s166_s16 = smov [#allocation5]  }
  0x11   :  { %s92_s17 = sshll.u32 %s166_s16, 4  ;;  %s93_s17 = int_to_ptr.vmem [resolvable:$true] %s92_s17 }
  0x12   :  { %s135_s18 = scalar_lea.vmem %s93_s17, 32  ;;  %p140_p6 = scmp.lt.s32.totalorder %s93_s17, %s93_s17 }
  0x13   :  { %p136_p5 = scmp.ne.s32.totalorder %s93_s17, %s135_s18  ;;  %p141_p7 = scmp.lt.s32.totalorder %s135_s18, %s135_s18 }
  0x15   :  { %p142_p8 = por %p141_p7, %p140_p6 }
  0x17   :  { %p143_p9 = pnand %p142_p8, %p136_p5 }
  0x80   :  { %v24_v1 = vpop.permute.xlu0 %23 }
  0x81   :  { %v26_v2 = vmax.f32 %v21_v0, %v24_v1 }
  0x83   :  { %31 = vrot.lane.b32.xlu0 %v26_v2, %s161_s12  ;;  %v27_v7 = vsub.f32 %v21_v0, %v26_v2 }
  0x85   :  { %v28_v8 = vmul.f32 1.442695, %v27_v7 }
  0xf5   :  { %v32_v3 = vpop.permute.xlu0 %31 }
  0xf6   :  { %v34_v4 = vsub.f32 %v21_v0, %v32_v3 }
  0xf8   :  { %v35_v5 = vmul.f32 1.442695, %v34_v4 }
  0xfa   :  { %109 = vpow2.f32 %v35_v5 }
  0xfb   :  { %111 = vpow2.f32 %v28_v8 }
 0x107   :  { %v110_v6 = vpop.eup %109 }
 0x108   :  { %38 = vrot.lane.b32.xlu1 %v110_v6, %s160_s11  ;;  %v112_v9 = vpop.eup %111 }
 0x17a   :  { %v39_v10 = vpop.permute.xlu1 %38 }
 0x17b   :  { %v41_v11 = vadd.f32 %v112_v9, %v39_v10 }
 0x17d   :  { %113 = vrcp.f32 %v41_v11 }
 0x18a   :  { %v114_v12 = vpop.eup %113 }
 0x18b   :  { %46 = vrot.lane.b32.xlu1 %v114_v12, %s161_s12  ;;  %v44_v13 = vmul.f32 %v114_v12, %v112_v9 }
 0x18d   :  { %51 = vrot.lane.b32.xlu0 %v44_v13, %s160_s11 }
 0x18f   :  { %54 = vrot.lane.b32.xlu1 %v44_v13, %s162_s0 }
 0x191   :  { %57 = vrot.lane.b32.xlu0 %v44_v13, %s163_s13 }
 0x1fd   :  { %v47_v14 = vpop.permute.xlu1 %46 }
 0x1fe   :  { %v49_v15 = vmul.f32 %v110_v6, %v47_v14 }
 0x1ff   :  { %v52_v16 = vpop.permute.xlu0 %51 }
 0x200   :  { %61 = vrot.lane.b32.xlu1 %v49_v15, %s164_s14  ;;  %64 = vrot.lane.b32.xlu0 %v49_v15, %s165_s15  ;;  %v71_v17 = vsel %vm70_vm0, %v44_v13, %v52_v16 }
 0x201   :  { %v55_v18 = vpop.permute.xlu1 %54 }
 0x202   :  { %v73_v19 = vsel %vm72_vm1, %v71_v17, %v55_v18 }
 0x203   :  { %v58_v20 = vpop.permute.xlu0 %57 }
 0x204   :  { %67 = vrot.lane.b32.xlu1 %v49_v15, %s161_s12  ;;  %v75_v21 = vsel %vm74_vm2, %v73_v19, %v58_v20 }
 0x272   :  { %v62_v22 = vpop.permute.xlu1 %61  ;;  %v65_v24 = vpop.permute.xlu0 %64 }
 0x273   :  { %v77_v23 = vsel %vm76_vm3, %v75_v21, %v62_v22 }
 0x274   :  { %v79_v25 = vsel %vm78_vm4, %v77_v23, %v65_v24 }
 0x276   :  { %v68_v26 = vpop.permute.xlu1 %67 }
 0x277   :  { %v81_v27 = vsel %vm80_vm5, %v79_v25, %v68_v26 }
 0x278   :  { %v83_v28 = vsel %vm82_vm6, %v81_v27, %v49_v15 }
 0x279   :  { %85 = vst.msk [vmem:[#allocation5] sm:$0x3] %vm84_vm7, %v83_v28 }
 0x27a   :  { %146 = shalt.err (!%p143_p9)
}
 0x27b   :  { %95 = dma.vmem_to_hbm [thread:$0]  %s93_s17, 32, %s184_s1, [#allocation4]  }
 0x27c   :  { %157 = dma.done.wait [#allocation4], 32  }
 0x27d   :  { %158 = vsyncadd [#allocation4], 4294967264 }
 0x27e   :  { %99 = vsyncpa [#allocation3], 1 }
 0x27f   :  { %100 = vsyncpa [#allocation4], 1 }

</bundles_post_ra>
